<compile_context>
chip_gen: v7x
topology: tpu7x:2x2x1
jax: 0.10.0
libtpu: 0.0.40
codegen_flags: <defaults>
</compile_context>

<pallas_src>
import jax
import jax.numpy as jnp
from jax.experimental import pallas as pl
from jax.experimental.pallas import tpu as pltpu

LANE = 128
BF16_SUBLANE = 16
MAX_BATCH_TILE = 512  # sized well inside v7x's 64 MiB VMEM (x tile ~0.9 MiB bf16)


def _round_up(n, m):
    return ((n + m - 1) // m) * m


def mlp_kernel(x_ref, w1_ref, b1_ref, w2_ref, b2_ref, o_ref):
    # x_ref : (TB, Din_p)   bf16      w1_ref: (Din_p, H_p)   bf16
    # b1_ref: (1, H_p)      f32       w2_ref: (H_p, Dout_p)  bf16
    # b2_ref: (1, Dout_p)   f32       o_ref : (TB, Dout_p)   f32
    h = jnp.dot(x_ref[...], w1_ref[...], preferred_element_type=jnp.float32)
    h = jnp.maximum(h + b1_ref[...], 0.0)                       # ReLU 1 (f32)
    y = jnp.dot(h.astype(jnp.bfloat16), w2_ref[...],
                preferred_element_type=jnp.float32)
    o_ref[...] = jnp.maximum(y + b2_ref[...], 0.0).astype(o_ref.dtype)  # ReLU 2


def prepare_params(w1, b1, w2, b2):
    """One-time weight prep: transpose to (in, out), zero-pad to lane-aligned
    shapes, cast matmul operands to bf16.  Call once, reuse every forward."""
    hidden, d_in = w1.shape
    d_out = w2.shape[0]
    d_in_p = _round_up(d_in, LANE)
    h_p = _round_up(hidden, LANE)
    d_out_p = _round_up(d_out, LANE)

    w1t = jnp.zeros((d_in_p, h_p), jnp.float32).at[:d_in, :hidden].set(w1.T)
    w2t = jnp.zeros((h_p, d_out_p), jnp.float32).at[:hidden, :d_out].set(w2.T)
    b1p = jnp.zeros((1, h_p), jnp.float32).at[0, :hidden].set(b1)
    b2p = jnp.zeros((1, d_out_p), jnp.float32).at[0, :d_out].set(b2)

    arrays = (w1t.astype(jnp.bfloat16), b1p, w2t.astype(jnp.bfloat16), b2p)
    dims = (d_in, d_out, d_in_p, h_p, d_out_p)
    return arrays, dims


def fashion_mnist_forward(x_nchw, params):
    """Forward pass with pre-prepared params. Returns (B, d_out) f32 logits."""
    (w1t, b1p, w2t, b2p), (d_in, d_out, d_in_p, h_p, d_out_p) = params

    B = x_nchw.shape[0]
    x2d = x_nchw.reshape(B, -1)                      # nn.Flatten (row-major)
    assert x2d.shape[1] == d_in

    # Batch tile: round tiny batches up to a bf16 sublane multiple, cap tile size.
    TB = min(MAX_BATCH_TILE, _round_up(B, BF16_SUBLANE))
    B_p = _round_up(B, TB)

    # Zero-pad batch rows and feature columns; cast the big x stream to bf16.
    xp = jnp.zeros((B_p, d_in_p), jnp.bfloat16)
    xp = xp.at[:B, :d_in].set(x2d.astype(jnp.bfloat16))

    out = pl.pallas_call(
        mlp_kernel,
        out_shape=jax.ShapeDtypeStruct((B_p, d_out_p), jnp.float32),
        grid_spec=pltpu.PrefetchScalarGridSpec(
            num_scalar_prefetch=0,
            grid=(B_p // TB,),
            in_specs=[
                pl.BlockSpec((TB, d_in_p), lambda i: (i, 0)),      # x: tiled stream
                pl.BlockSpec((d_in_p, h_p), lambda i: (0, 0)),     # w1t: resident
                pl.BlockSpec((1, h_p), lambda i: (0, 0)),          # b1 : resident
                pl.BlockSpec((h_p, d_out_p), lambda i: (0, 0)),    # w2t: resident
                pl.BlockSpec((1, d_out_p), lambda i: (0, 0)),      # b2 : resident
            ],
            out_specs=pl.BlockSpec((TB, d_out_p), lambda i: (i, 0)),
        ),
        compiler_params=pltpu.CompilerParams(
            dimension_semantics=("parallel",),       # shard batch tiles across TCs
        ),
    )(xp, w1t, b1p, w2t, b2p)

    return out[:B, :d_out]


def fashion_mnist_model_v1(x_nchw, w1, b1, w2, b2):
    """Convenience wrapper matching the PyTorch module signature (prep + forward)."""
    params = prepare_params(w1, b1, w2, b2)
    return fashion_mnist_forward(x_nchw, params)


def _reference(x_nchw, w1, b1, w2, b2):
    B = x_nchw.shape[0]
    x2d = x_nchw.reshape(B, -1)
    h = jnp.maximum(x2d @ w1.T + b1, 0.0)
    return jnp.maximum(h @ w2.T + b2, 0.0)


if __name__ == "__main__":
    # FashionMNIST-like shapes: batch=2, 1x28x28 images, 32 hidden, 10 classes.
    B, C, H, W = 2, 1, 28, 28
    in_features = C * H * W          # 784
    hidden_units = 32
    output_shape = 10

    key = jax.random.PRNGKey(0)
    kx, k1, k2, k3, k4 = jax.random.split(key, 5)

    x = jax.random.normal(kx, (B, C, H, W), dtype=jnp.float32)

    # PyTorch-style uniform(-1/sqrt(fan_in), 1/sqrt(fan_in)) init.
    lim1 = 1.0 / jnp.sqrt(jnp.float32(in_features))
    lim2 = 1.0 / jnp.sqrt(jnp.float32(hidden_units))
    w1 = jax.random.uniform(k1, (hidden_units, in_features), jnp.float32, -lim1, lim1)
    b1 = jax.random.uniform(k2, (hidden_units,), jnp.float32, -lim1, lim1)
    w2 = jax.random.uniform(k3, (output_shape, hidden_units), jnp.float32, -lim2, lim2)
    b2 = jax.random.uniform(k4, (output_shape,), jnp.float32, -lim2, lim2)

    # One-time weight prep (hoisted out of the hot forward path), then forward.
    params = prepare_params(w1, b1, w2, b2)
    out = fashion_mnist_forward(x, params)
    out = jax.block_until_ready(out)

    ref = _reference(x, w1, b1, w2, b2)
    assert out.shape == (B, output_shape)
    # bf16 matmul inputs with f32 accumulation -> loose-but-tight-enough check.
    assert jnp.allclose(out, ref, atol=5e-2, rtol=5e-2), (
        f"max abs diff {float(jnp.max(jnp.abs(out - ref)))}")

    print("KERNEL_OK")
</pallas_src>

<mosaic_0001>
module attributes {stable_mosaic.version = 11 : i64} {
  func.func @mlp_kernel(%arg0: i32, %arg1: memref<16x896xbf16, #tpu.memory_space<vmem>>, %arg2: memref<896x128xbf16, #tpu.memory_space<vmem>>, %arg3: memref<1x128xf32, #tpu.memory_space<vmem>>, %arg4: memref<128x128xbf16, #tpu.memory_space<vmem>>, %arg5: memref<1x128xf32, #tpu.memory_space<vmem>>, %arg6: memref<16x128xf32, #tpu.memory_space<vmem>>) attributes {dimension_semantics = [#tpu.dimension_semantics<parallel>], iteration_bounds = array<i64: 1>, scalar_prefetch = 0 : i64, scratch_operands = 0 : i64, tpu.core_type = #tpu.core_type<tc>, window_params = [{transform_indices = @transform_0, window_bounds = array<i64: 16, 896>}, {pipeline_mode = #tpu.pipeline_mode<synchronous>, transform_indices = @transform_1, window_bounds = array<i64: 896, 128>}, {pipeline_mode = #tpu.pipeline_mode<synchronous>, transform_indices = @transform_2, window_bounds = array<i64: 1, 128>}, {pipeline_mode = #tpu.pipeline_mode<synchronous>, transform_indices = @transform_3, window_bounds = array<i64: 128, 128>}, {pipeline_mode = #tpu.pipeline_mode<synchronous>, transform_indices = @transform_4, window_bounds = array<i64: 1, 128>}, {transform_indices = @transform_5, window_bounds = array<i64: 16, 128>}]} {
    %c0 = arith.constant 0 : index
    %c0_0 = arith.constant 0 : index
    %0 = vector.load %arg1[%c0, %c0_0] : memref<16x896xbf16, #tpu.memory_space<vmem>>, vector<16x896xbf16>
    %c0_1 = arith.constant 0 : index
    %c0_2 = arith.constant 0 : index
    %1 = vector.load %arg2[%c0_1, %c0_2] : memref<896x128xbf16, #tpu.memory_space<vmem>>, vector<896x128xbf16>
    %cst = arith.constant dense<0.000000e+00> : vector<16x128xf32>
    %2 = tpu.matmul %0, %1, %cst {dimension_numbers = #tpu.dot_dimension_numbers<[1], [0], [0], [1], [0, 0, 1, 1], [], []>} : vector<16x896xbf16>, vector<896x128xbf16>, vector<16x128xf32> -> vector<16x128xf32>
    %c0_3 = arith.constant 0 : index
    %c0_4 = arith.constant 0 : index
    %3 = vector.load %arg3[%c0_3, %c0_4] : memref<1x128xf32, #tpu.memory_space<vmem>>, vector<1x128xf32>
    %4 = vector.broadcast %3 : vector<1x128xf32> to vector<16x128xf32>
    %5 = arith.addf %2, %4 : vector<16x128xf32>
    %cst_5 = arith.constant 0.000000e+00 : f32
    %6 = vector.broadcast %cst_5 : f32 to vector<16x128xf32>
    %7 = arith.maximumf %5, %6 : vector<16x128xf32>
    %8 = arith.truncf %7 : vector<16x128xf32> to vector<16x128xbf16>
    %c0_6 = arith.constant 0 : index
    %c0_7 = arith.constant 0 : index
    %9 = vector.load %arg4[%c0_6, %c0_7] : memref<128x128xbf16, #tpu.memory_space<vmem>>, vector<128x128xbf16>
    %cst_8 = arith.constant dense<0.000000e+00> : vector<16x128xf32>
    %10 = tpu.matmul %8, %9, %cst_8 {dimension_numbers = #tpu.dot_dimension_numbers<[1], [0], [0], [1], [0, 0, 1, 1], [], []>} : vector<16x128xbf16>, vector<128x128xbf16>, vector<16x128xf32> -> vector<16x128xf32>
    %c0_9 = arith.constant 0 : index
    %c0_10 = arith.constant 0 : index
    %11 = vector.load %arg5[%c0_9, %c0_10] : memref<1x128xf32, #tpu.memory_space<vmem>>, vector<1x128xf32>
    %12 = vector.broadcast %11 : vector<1x128xf32> to vector<16x128xf32>
    %13 = arith.addf %10, %12 : vector<16x128xf32>
    %cst_11 = arith.constant 0.000000e+00 : f32
    %14 = vector.broadcast %cst_11 : f32 to vector<16x128xf32>
    %15 = arith.maximumf %13, %14 : vector<16x128xf32>
    %c0_12 = arith.constant 0 : index
    %c0_13 = arith.constant 0 : index
    %16 = vector.load %arg6[%c0_12, %c0_13] : memref<16x128xf32, #tpu.memory_space<vmem>>, vector<16x128xf32>
    tpu.vector_store %arg6[%c0_12, %c0_13], %15 {strides = array<i32>} : memref<16x128xf32, #tpu.memory_space<vmem>>, vector<16x128xf32>,
    return
  }
  func.func @transform_0(%arg0: i32) -> (i32, i32) {
    %c0_i32 = arith.constant 0 : i32
    %c0_i32_0 = arith.constant 0 : i32
    return %arg0, %c0_i32 : i32, i32
  }
  func.func @transform_1(%arg0: i32) -> (i32, i32) {
    %c0_i32 = arith.constant 0 : i32
    %c0_i32_0 = arith.constant 0 : i32
    %c0_i32_1 = arith.constant 0 : i32
    return %c0_i32, %c0_i32_0 : i32, i32
  }
  func.func @transform_2(%arg0: i32) -> (i32, i32) {
    %c0_i32 = arith.constant 0 : i32
    %c0_i32_0 = arith.constant 0 : i32
    %c0_i32_1 = arith.constant 0 : i32
    return %c0_i32, %c0_i32_0 : i32, i32
  }
  func.func @transform_3(%arg0: i32) -> (i32, i32) {
    %c0_i32 = arith.constant 0 : i32
    %c0_i32_0 = arith.constant 0 : i32
    %c0_i32_1 = arith.constant 0 : i32
    return %c0_i32, %c0_i32_0 : i32, i32
  }
  func.func @transform_4(%arg0: i32) -> (i32, i32) {
    %c0_i32 = arith.constant 0 : i32
    %c0_i32_0 = arith.constant 0 : i32
    %c0_i32_1 = arith.constant 0 : i32
    return %c0_i32, %c0_i32_0 : i32, i32
  }
  func.func @transform_5(%arg0: i32) -> (i32, i32) {
    %c0_i32 = arith.constant 0 : i32
    %c0_i32_0 = arith.constant 0 : i32
    return %arg0, %c0_i32 : i32, i32
  }
}

</mosaic_0001>

<bundles_post_ra>
// kernel: tpu_custom_call.1
= control target key start
LH: loop header
LB: loop body
LE: loop exit
PB: predicated region body
PF: predicated region fallthrough
CT: control target
= control target key end

     0   :  { %10 = vsyncpa [#allocation3], 0  ;;  %s1362_s0 = inlined_call_operand.hbm [shape: bf16[16,896], index: 0, kind: input, shape index: {}]   ;;  %s1363_s1 = inlined_call_operand.hbm [shape: bf16[896,128], index: 1, kind: input, shape index: {}]   ;;  %s1364_s2 = inlined_call_operand.vmem [shape: f32[1,128], index: 2, kind: input, shape index: {}]   ;;  %s1365_s3 = inlined_call_operand.hbm [shape: bf16[128,128], index: 3, kind: input, shape index: {}]   ;;  %s1366_s4 = inlined_call_operand.vmem [shape: f32[1,128], index: 4, kind: input, shape index: {}]   ;;  %s1367_s5 = inlined_call_operand.hbm [shape: f32[16,128], index: 5, kind: output, shape index: {}]  }
   0x1   :  { %11 = vsyncpa [#allocation6], 0 }
   0x2   :  { %12 = vsyncpa [#allocation4], 0  ;;  %s1240_s18 = smov [#allocation5]   ;;  %s1146_s22 = scalar_lea.hbm %s1363_s1, 7168 }
   0x3   :  { %s30_s19 = sshll.u32 %s1240_s18, 4  ;;  %p1147_p0 = scmp.ne.s32.totalorder %s1363_s1, %s1146_s22  ;;  %s31_s19 = int_to_ptr.vmem [resolvable:$true] %s30_s19 }
   0x4   :  { %p1150_p1 = scmp.lt.u32.totalorder %s1146_s22, %s1363_s1 }
   0x6   :  { %p1152_p2 = pnand %p1150_p1, %p1147_p0 }
   0x8   :  { %1155 = shalt.err (!%p1152_p2)
}
   0x9   :  { %s1156_s27 = scalar_lea.vmem %s31_s19, 7168  ;;  %p1161_p4 = scmp.lt.s32.totalorder %s31_s19, %s31_s19 }
   0xa   :  { %p1157_p3 = scmp.ne.s32.totalorder %s31_s19, %s1156_s27  ;;  %p1162_p5 = scmp.lt.s32.totalorder %s1156_s27, %s1156_s27 }
   0xc   :  { %p1163_p6 = por %p1162_p5, %p1161_p4 }
   0xe   :  { %p1164_p7 = pnand %p1163_p6, %p1157_p3 }
  0x10   :  { %1167 = shalt.err (!%p1164_p7)
}
  0x11   :  { %s1241_s28 = smov 64   ;;  %s1242_s29 = smov 4  }
  0x12   :  { %36 = dma.hbm_to_vmem [thread:$0]  %s1363_s1, 7168, %s31_s19, [#allocation6], %s1241_s28, %s1241_s28, %s1242_s29  }
  0x13   :  { %s1243_s7 = smov [#allocation2]   ;;  %s1168_s11 = scalar_lea.hbm %s1362_s0, 896 }
  0x14   :  { %s18_s8 = sshll.u32 %s1243_s7, 4  ;;  %p1169_p8 = scmp.ne.s32.totalorder %s1362_s0, %s1168_s11  ;;  %s19_s8 = int_to_ptr.vmem [resolvable:$true] %s18_s8 }
  0x15   :  { %p1172_p9 = scmp.lt.u32.totalorder %s1168_s11, %s1362_s0 }
  0x17   :  { %p1174_p10 = pnand %p1172_p9, %p1169_p8 }
  0x19   :  { %1177 = shalt.err (!%p1174_p10)
}
  0x1a   :  { %s1178_s16 = scalar_lea.vmem %s19_s8, 896  ;;  %p1183_p12 = scmp.lt.s32.totalorder %s19_s8, %s19_s8 }
  0x1b   :  { %p1179_p11 = scmp.ne.s32.totalorder %s19_s8, %s1178_s16  ;;  %p1184_p13 = scmp.lt.s32.totalorder %s1178_s16, %s1178_s16 }
  0x1d   :  { %p1185_p0 = por %p1184_p13, %p1183_p12 }
  0x1f   :  { %p1186_p1 = pnand %p1185_p0, %p1179_p11 }
  0x21   :  { %1189 = shalt.err (!%p1186_p1)
}
  0x22   :  { %s1244_s1 = smov 448   ;;  %s1245_s17 = smov 28  }
  0x23   :  { %24 = dma.hbm_to_vmem [thread:$0]  %s1362_s0, 896, %s19_s8, [#allocation3], %s1244_s1, %s1244_s1, %s1245_s17  }
  0x24   :  { %s1246_s20 = smov [#allocation7]   ;;  %s1190_s24 = scalar_lea.hbm %s1365_s3, 1024 }
  0x25   :  { %s44_s21 = sshll.u32 %s1246_s20, 4  ;;  %p1191_p2 = scmp.ne.s32.totalorder %s1365_s3, %s1190_s24  ;;  %s45_s21 = int_to_ptr.vmem [resolvable:$true] %s44_s21 }
  0x26   :  { %p1194_p3 = scmp.lt.u32.totalorder %s1190_s24, %s1365_s3 }
  0x28   :  { %p1196_p4 = pnand %p1194_p3, %p1191_p2 }
  0x2a   :  { %1199 = shalt.err (!%p1196_p4)
}
  0x2b   :  { %s1200_s6 = scalar_lea.vmem %s45_s21, 1024  ;;  %p1205_p6 = scmp.lt.s32.totalorder %s45_s21, %s45_s21 }
  0x2c   :  { %p1201_p5 = scmp.ne.s32.totalorder %s45_s21, %s1200_s6  ;;  %p1206_p7 = scmp.lt.s32.totalorder %s1200_s6, %s1200_s6 }
  0x2e   :  { %p1207_p8 = por %p1206_p7, %p1205_p6 }
  0x30   :  { %p1208_p9 = pnand %p1207_p8, %p1201_p5 }
  0x32   :  { %1211 = shalt.err (!%p1208_p9)
}
  0x33   :  { %50 = dma.hbm_to_vmem [thread:$0]  %s1365_s3, 1024, %s45_s21, [#allocation6], %s1241_s28, %s1241_s28, %s1242_s29  }
  0x34   :  { %1234 = dma.done.wait [#allocation3], 896  }
  0x35   :  { %1235 = vsyncadd [#allocation3], 4294966400 }
  0x36   :  { %1236 = dma.done.wait [#allocation6], 8192  }
  0x37   :  { %1237 = vsyncadd [#allocation6], 4294959104  ;;  %v1072_v0 = vld [vmem:[#allocation5 + $0x40] sm:$0xff]   ;;  %v1076_v4 = vld [vmem:[#allocation5 + $0x48] sm:$0xff]   ;;  %v1247_v38 = vmov 0.0   ;;  %vm1248_vm0 = vmmov 0  }
  0x38   :  { %v1073_v1 = vld [vmem:[#allocation5] sm:$0xff]   ;;  %936 = vmatprep.subr.bf16.mxu0 %v1072_v0  ;;  %v1077_v5 = vld [vmem:[#allocation5 + $0x8] sm:$0xff]   ;;  %v1080_v8 = vld [vmem:[#allocation5 + $0x50] sm:$0xff]   ;;  %s1249_s8 = smov [#allocation8]  }
  0x39   :  { %v1074_v2 = vld [vmem:[#allocation5 + $0xc0] sm:$0xff]   ;;  %937 = vmatpush3.bf16.msra.mxu0 %v1073_v1  ;;  %v1078_v6 = vld [vmem:[#allocation5 + $0xc8] sm:$0xff]   ;;  %v1081_v9 = vld [vmem:[#allocation5 + $0x10] sm:$0xff]   ;;  %s850_s9 = sshll.u32 %s1249_s8, 4  ;;  %s851_s9 = int_to_ptr.vmem [resolvable:$true] %s850_s9 }
  0x3a   :  { %v1075_v3 = vld [vmem:[#allocation5 + $0x80] sm:$0xff]   ;;  %958 = vmatprep.subr.bf16.mxu1 %v1074_v2  ;;  %938 = vmatprep.subr.bf16.mxu0 %v1076_v4  ;;  %v1079_v7 = vld [vmem:[#allocation5 + $0x88] sm:$0xff]   ;;  %v1082_v10 = vld [vmem:[#allocation5 + $0xd0] sm:$0xff]   ;;  %s1212_s10 = scalar_lea.vmem %s851_s9, 256  ;;  %p1217_p11 = scmp.lt.s32.totalorder %s851_s9, %s851_s9 }
  0x3b   :  { %959 = vmatpush3.bf16.msra.mxu1 %v1075_v3  ;;  %v1083_v11 = vld [vmem:[#allocation5 + $0x90] sm:$0xff]   ;;  %v1084_v12 = vld [vmem:[#allocation5 + $0x58] sm:$0xff]   ;;  %v1088_v16 = vld [vmem:[#allocation5 + $0x60] sm:$0xff]   ;;  %p1213_p10 = scmp.ne.s32.totalorder %s851_s9, %s1212_s10  ;;  %p1218_p12 = scmp.lt.s32.totalorder %s1212_s10, %s1212_s10 }
  0x3c   :  { %960 = vmatprep.subr.bf16.mxu1 %v1078_v6  ;;  %v1085_v13 = vld [vmem:[#allocation5 + $0x18] sm:$0xff]   ;;  %v1089_v17 = vld [vmem:[#allocation5 + $0x20] sm:$0xff]   ;;  %v1092_v20 = vld [vmem:[#allocation5 + $0x68] sm:$0xff]  }
  0x3d   :  { %939 = vmatpush3.bf16.msra.mxu0 %v1077_v5  ;;  %v1086_v14 = vld [vmem:[#allocation5 + $0xd8] sm:$0xff]   ;;  %v1090_v18 = vld [vmem:[#allocation5 + $0xe0] sm:$0xff]   ;;  %v1093_v21 = vld [vmem:[#allocation5 + $0x28] sm:$0xff]   ;;  %p1219_p13 = por %p1218_p12, %p1217_p11 }
  0x3e   :  { %940 = vmatprep.subr.bf16.mxu0 %v1080_v8  ;;  %v1087_v15 = vld [vmem:[#allocation5 + $0x98] sm:$0xff]   ;;  %v1091_v19 = vld [vmem:[#allocation5 + $0xa0] sm:$0xff]   ;;  %v1094_v22 = vld [vmem:[#allocation5 + $0xe8] sm:$0xff]  }
  0x3f   :  { %961 = vmatpush3.bf16.msra.mxu1 %v1079_v7  ;;  %v1095_v23 = vld [vmem:[#allocation5 + $0xa8] sm:$0xff]   ;;  %v1096_v24 = vld [vmem:[#allocation5 + $0x70] sm:$0xff]   ;;  %v1100_v28 = vld [vmem:[#allocation5 + $0x78] sm:$0xff]   ;;  %p1220_p0 = pnand %p1219_p13, %p1213_p10 }
  0x40   :  { %962 = vmatprep.subr.bf16.mxu1 %v1082_v10  ;;  %v1097_v25 = vld [vmem:[#allocation5 + $0x30] sm:$0xff]   ;;  %v1101_v29 = vld [vmem:[#allocation5 + $0x38] sm:$0xff]   ;;  %v1103_v31 = vld [vmem:[#allocation2] ss:$28 sps:$4 sm:$0xff]  }
  0x41   :  { %941 = vmatpush3.bf16.msra.mxu0 %v1081_v9  ;;  %v1098_v26 = vld [vmem:[#allocation5 + $0xf0] sm:$0xff]   ;;  %v1102_v30 = vld [vmem:[#allocation5 + $0xf8] sm:$0xff]   ;;  %v1105_v32 = vld [vmem:[#allocation2 + $0x4] ss:$28 sps:$4 sm:$0xff]  }
  0x42   :  { %942 = vmatprep.subr.bf16.mxu0 %v1084_v12  ;;  %v1099_v27 = vld [vmem:[#allocation5 + $0xb0] sm:$0xff]   ;;  %v1106_v33 = vld [vmem:[#allocation5 + $0xb8] sm:$0xff]   ;;  %594 = vmatprep.mubr.bf16.mxu0 %v1105_v32  ;;  %v1107_v34 = vld [vmem:[#allocation5 + $0x140] sm:$0xff]  }
  0x43   :  { %963 = vmatpush3.bf16.msra.mxu1 %v1083_v11  ;;  %v1108_v35 = vld [vmem:[#allocation2 + $0x8] ss:$28 sps:$4 sm:$0xff]   ;;  %v1111_v37 = vld [vmem:[#allocation5 + $0x100] sm:$0xff]   ;;  %v1119_v46 = vld [vmem:[#allocation5 + $0x158] sm:$0xff]  }
  0x44   :  { %964 = vmatprep.subr.bf16.mxu1 %v1086_v14  ;;  %v1110_v36 = vld [vmem:[#allocation2 + $0xc] ss:$28 sps:$4 sm:$0xff]   ;;  %v1112_v39 = vld [vmem:[#allocation5 + $0x180] sm:$0xff]   ;;  %v1113_v40 = vld [vmem:[#allocation5 + $0x148] sm:$0xff]  }
  0x45   :  { %943 = vmatpush3.bf16.msra.mxu0 %v1085_v13  ;;  %635 = vmatprep.mubr.bf16.mxu1 %v1110_v36  ;;  %v1114_v41 = vld [vmem:[#allocation5 + $0x108] sm:$0xff]   ;;  %v1116_v43 = vld [vmem:[#allocation5 + $0x150] sm:$0xff]   ;;  %v1120_v47 = vld [vmem:[#allocation5 + $0x118] sm:$0xff]  }
  0x46   :  { %944 = vmatprep.subr.bf16.mxu0 %v1088_v16  ;;  %v1115_v42 = vld [vmem:[#allocation5 + $0x188] sm:$0xff]   ;;  %v1117_v44 = vld [vmem:[#allocation5 + $0x110] sm:$0xff]   ;;  %v1121_v48 = vld [vmem:[#allocation5 + $0x198] sm:$0xff]  }
  0x47   :  { %965 = vmatpush3.bf16.msra.mxu1 %v1087_v15  ;;  %v1118_v45 = vld [vmem:[#allocation5 + $0x190] sm:$0xff]   ;;  %v1122_v49 = vld [vmem:[#allocation5 + $0x160] sm:$0xff]   ;;  %v1125_v52 = vld [vmem:[#allocation5 + $0x168] sm:$0xff]  }
  0x48   :  { %966 = vmatprep.subr.bf16.mxu1 %v1090_v18  ;;  %v1123_v50 = vld [vmem:[#allocation5 + $0x120] sm:$0xff]   ;;  %v1126_v53 = vld [vmem:[#allocation5 + $0x128] sm:$0xff]   ;;  %v1128_v55 = vld [vmem:[#allocation5 + $0x170] sm:$0xff]  }
  0x49   :  { %945 = vmatpush3.bf16.msra.mxu0 %v1089_v17  ;;  %v1124_v51 = vld [vmem:[#allocation5 + $0x1a0] sm:$0xff]   ;;  %v1127_v54 = vld [vmem:[#allocation5 + $0x1a8] sm:$0xff]   ;;  %v1129_v56 = vld [vmem:[#allocation5 + $0x130] sm:$0xff]  }
  0x4a   :  { %946 = vmatprep.subr.bf16.mxu0 %v1092_v20  ;;  %v1130_v57 = vld [vmem:[#allocation5 + $0x1b0] sm:$0xff]   ;;  %v1135_v58 = vld [vmem:[#allocation2 + $0x14] ss:$28 sps:$4 sm:$0xff]   ;;  %v1138_v0 = vld [vmem:[#allocation7] sm:$0xff]  }
  0x4b   :  { %967 = vmatpush3.bf16.msra.mxu1 %v1091_v19  ;;  %v1131_v59 = vld [vmem:[#allocation5 + $0x178] sm:$0xff]   ;;  %v1139_v1 = vld [vmem:[#allocation7 + $0x8] sm:$0xff]   ;;  %v1140_v2 = vld [vmem:[#allocation7 + $0x10] sm:$0xff]  }
  0x4c   :  { %968 = vmatprep.subr.bf16.mxu1 %v1094_v22  ;;  %v1132_v60 = vld [vmem:[#allocation5 + $0x138] sm:$0xff]   ;;  %v1142_v4 = vld [vmem:[#allocation7 + $0x20] sm:$0xff]   ;;  %v1143_v5 = vld [vmem:[#allocation7 + $0x28] sm:$0xff]  }
  0x4d   :  { %947 = vmatpush3.bf16.msra.mxu0 %v1093_v21  ;;  %v1136_v61 = vld [vmem:[#allocation5 + $0x1b8] sm:$0xff]   ;;  %v1144_v6 = vld [vmem:[#allocation7 + $0x30] sm:$0xff]   ;;  %v863_v9 = vld [vmem:[%s1364_s2] ss:$0 sm:$0xff] }
  0x4e   :  { %948 = vmatprep.subr.bf16.mxu0 %v1096_v24  ;;  %v1133_v62 = vld [vmem:[#allocation2 + $0x10] ss:$28 sps:$4 sm:$0xff]   ;;  %v1137_v63 = vld [vmem:[#allocation2 + $0x18] ss:$28 sps:$4 sm:$0xff]  }
  0x4f   :  { %969 = vmatpush3.bf16.msra.mxu1 %v1095_v23  ;;  %v1141_v3 = vld [vmem:[#allocation7 + $0x18] sm:$0xff]  }
  0x50   :  { %970 = vmatprep.subr.bf16.mxu1 %v1098_v26  ;;  %v1145_v7 = vld [vmem:[#allocation7 + $0x38] sm:$0xff]  }
  0x51   :  { %949 = vmatpush3.bf16.msra.mxu0 %v1097_v25 }
  0x52   :  { %950 = vmatprep.subr.bf16.mxu0 %v1100_v28 }
  0x53   :  { %971 = vmatpush3.bf16.msra.mxu1 %v1099_v27 }
  0x54   :  { %972 = vmatprep.subr.bf16.mxu1 %v1102_v30 }
  0x55   :  { %951 = vmatpush3.bf16.msra.mxu0 %v1101_v29 }
  0x56   :  { %980 = vmatprep.subr.bf16.mxu0 %v1107_v34 }
  0x57   :  { %973 = vmatpush3.bf16.msra.mxu1 %v1106_v33 }
  0x58   :  { %595 = vmatmul.mubr.bf16.vlgmr.msra.gmra.mrb[0].mxu0 %v1103_v31  ;;  %1020 = vmatprep.subr.bf16.mxu1 %v1247_v38 }
  0x59   :  { %981 = vmatpush3.bf16.msra.mxu0 %v1111_v37  ;;  %676 = vmatprep.mubr.bf16.mxu0 %v1135_v58 }
  0x5a   :  { %636 = vmatmul.mubr.bf16.vlgmr.msra.gmra.mrb[0].mxu1 %v1108_v35  ;;  %982 = vmatprep.subr.bf16.mxu0 %v1113_v40 }
  0x5b   :  { %1021 = vmatpush3.bf16.msra.mxu1 %v1112_v39  ;;  %1036 = vmatprep.mubr.msk.bf16.mxu1 %vm1248_vm0, %v1247_v38 }
  0x5c   :  { %1022 = vmatprep.subr.bf16.mxu1 %v1247_v38 }
  0x5d   :  { %983 = vmatpush3.bf16.msra.mxu0 %v1114_v41 }
  0x5e   :  { %984 = vmatprep.subr.bf16.mxu0 %v1116_v43 }
  0x5f   :  { %1023 = vmatpush3.bf16.msra.mxu1 %v1115_v42  ;;  %v927_v42 = vld [vmem:[%s1366_s4] ss:$0 sm:$0xff] }
  0x60   :  { %1024 = vmatprep.subr.bf16.mxu1 %v1247_v38 }
  0x61   :  { %985 = vmatpush3.bf16.msra.mxu0 %v1117_v44 }
  0x62   :  { %986 = vmatprep.subr.bf16.mxu0 %v1119_v46 }
  0x63   :  { %1025 = vmatpush3.bf16.msra.mxu1 %v1118_v45 }
  0x64   :  { %1026 = vmatprep.subr.bf16.mxu1 %v1247_v38 }
  0x65   :  { %987 = vmatpush3.bf16.msra.mxu0 %v1120_v47 }
  0x66   :  { %988 = vmatprep.subr.bf16.mxu0 %v1122_v49 }
  0x67   :  { %1027 = vmatpush3.bf16.msra.mxu1 %v1121_v48 }
  0x68   :  { %1028 = vmatprep.subr.bf16.mxu1 %v1247_v38 }
  0x69   :  { %989 = vmatpush3.bf16.msra.mxu0 %v1123_v50 }
  0x6a   :  { %990 = vmatprep.subr.bf16.mxu0 %v1125_v52 }
  0x6b   :  { %1029 = vmatpush3.bf16.msra.mxu1 %v1124_v51 }
  0x6c   :  { %1030 = vmatprep.subr.bf16.mxu1 %v1247_v38 }
  0x6d   :  { %991 = vmatpush3.bf16.msra.mxu0 %v1126_v53 }
  0x6e   :  { %992 = vmatprep.subr.bf16.mxu0 %v1128_v55 }
  0x6f   :  { %1031 = vmatpush3.bf16.msra.mxu1 %v1127_v54 }
  0x70   :  { %1032 = vmatprep.subr.bf16.mxu1 %v1247_v38 }
  0x71   :  { %993 = vmatpush3.bf16.msra.mxu0 %v1129_v56 }
  0x72   :  { %994 = vmatprep.subr.bf16.mxu0 %v1131_v59 }
  0x73   :  { %1033 = vmatpush3.bf16.msra.mxu1 %v1130_v57 }
  0x74   :  { %1034 = vmatprep.subr.bf16.mxu1 %v1247_v38 }
  0x75   :  { %995 = vmatpush3.bf16.msra.mxu0 %v1132_v60 }
  0x76   :  { %1040 = vmatprep.subr.bf16.mxu0 %v1247_v38 }
  0x77   :  { %1035 = vmatpush3.bf16.msra.mxu1 %v1136_v61 }
  0x78   :  { %677 = vmatmul.mubr.bf16.vlgmr.msra.gmra.mrb[4].mxu0 %v1133_v62 }
  0x79   :  { %1056 = vmatprep.mubr.msk.bf16.mxu0 %vm1248_vm0, %v1247_v38  ;;  %1041 = vmatpush3.bf16.msra.mxu0 %v1138_v0 }
  0x7a   :  { %1037 = vmatmul.mubr.bf16.vlgmr.msra.gmra.mrb[4].mxu1 %v1137_v63  ;;  %1042 = vmatprep.subr.bf16.mxu0 %v1247_v38 }
  0x7d   :  { %1043 = vmatpush3.bf16.msra.mxu0 %v1139_v1 }
  0x7e   :  { %1044 = vmatprep.subr.bf16.mxu0 %v1247_v38 }
  0x81   :  { %1045 = vmatpush3.bf16.msra.mxu0 %v1140_v2 }
  0x82   :  { %1046 = vmatprep.subr.bf16.mxu0 %v1247_v38 }
  0x85   :  { %1047 = vmatpush3.bf16.msra.mxu0 %v1141_v3 }
  0x86   :  { %1048 = vmatprep.subr.bf16.mxu0 %v1247_v38 }
  0x89   :  { %1049 = vmatpush3.bf16.msra.mxu0 %v1142_v4 }
  0x8a   :  { %1050 = vmatprep.subr.bf16.mxu0 %v1247_v38 }
  0x8d   :  { %1051 = vmatpush3.bf16.msra.mxu0 %v1143_v5 }
  0x8e   :  { %1052 = vmatprep.subr.bf16.mxu0 %v1247_v38 }
  0x91   :  { %1053 = vmatpush3.bf16.msra.mxu0 %v1144_v6 }
  0x92   :  { %1054 = vmatprep.subr.bf16.mxu0 %v1247_v38 }
  0x95   :  { %1055 = vmatpush3.bf16.msra.mxu0 %v1145_v7 }
 0x12b   :  { %v952_v8 = vpop.f32.mrb[0].mxu0 }
 0x12c   :  { %v953_v10 = vpop.f32.mrb[1].mxu0 }
 0x12d   :  { %v954_v11 = vadd.f32 %v953_v10, %v952_v8  ;;  %v955_v12 = vpop.f32.mrb[2].mxu0  ;;  %v974_v13 = vpop.f32.mrb[0].mxu1 }
 0x12e   :  { %v956_v14 = vpop.f32.mrb[3].mxu0  ;;  %v975_v17 = vpop.f32.mrb[1].mxu1 }
 0x12f   :  { %v597_v15 = vadd.f32 %v954_v11, %v863_v9  ;;  %v957_v16 = vadd.f32 %v956_v14, %v955_v12  ;;  %v976_v18 = vadd.f32 %v975_v17, %v974_v13  ;;  %v977_v19 = vpop.f32.mrb[2].mxu1 }
 0x130   :  { %v978_v21 = vpop.f32.mrb[3].mxu1 }
 0x131   :  { %v600_v20 = vadd.f32 %v957_v16, %v863_v9  ;;  %v638_v22 = vadd.f32 %v976_v18, %v597_v15  ;;  %v979_v23 = vadd.f32 %v978_v21, %v977_v19 }
 0x133   :  { %v641_v24 = vadd.f32 %v979_v23, %v600_v20 }
 0x14b   :  { %v996_v25 = vpop.f32.mrb[4].mxu0 }
 0x14c   :  { %v997_v26 = vpop.f32.mrb[5].mxu0 }
 0x14d   :  { %v719_v27 = vpop.f32.mrb[4].mxu1  ;;  %v998_v28 = vadd.f32 %v997_v26, %v996_v25  ;;  %v999_v29 = vpop.f32.mrb[6].mxu0 }
 0x14e   :  { %v1038_v30 = vpop.f32.mrb[5].mxu1  ;;  %v1000_v31 = vpop.f32.mrb[7].mxu0 }
 0x14f   :  { %v722_v32 = vpop.f32.mrb[6].mxu1  ;;  %v679_v33 = vadd.f32 %v998_v28, %v638_v22  ;;  %v1001_v34 = vadd.f32 %v1000_v31, %v999_v29 }
 0x150   :  { %v1039_v35 = vpop.f32.mrb[7].mxu1 }
 0x151   :  { %v720_v36 = vadd.f32 %v719_v27, %v679_v33  ;;  %v682_v37 = vadd.f32 %v1001_v34, %v641_v24 }
 0x153   :  { %v723_v38 = vadd.f32 %v722_v32, %v682_v37  ;;  %v726_v39 = vmax.f32 %v720_v36, 0.0 }
 0x155   :  { %v727_v40 = vmax.f32 %v723_v38, 0.0 }
 0x157   :  { %v728_v41 = vpack.c.bf16 %v727_v40, %v726_v39 }
 0x159   :  { %1057 = vmatmul.mubr.bf16.vlgmr.msra.gmra.mrb[8].mxu0 %v728_v41 }
 0x22c   :  { %v834_v43 = vpop.f32.mrb[8].mxu0 }
 0x22d   :  { %v835_v44 = vadd.f32 %v927_v42, %v834_v43  ;;  %v1058_v45 = vpop.f32.mrb[9].mxu0 }
 0x22e   :  { %v837_v46 = vpop.f32.mrb[10].mxu0 }
 0x22f   :  { %v841_v47 = vmax.f32 %v835_v44, 0.0  ;;  %v838_v48 = vadd.f32 %v927_v42, %v837_v46  ;;  %v1059_v49 = vpop.f32.mrb[11].mxu0 }
 0x231   :  { %843 = vst [vmem:[#allocation8] sm:$0xff] %v841_v47  ;;  %v842_v50 = vmax.f32 %v838_v48, 0.0 }
 0x233   :  { %844 = vst [vmem:[#allocation8 + $0x8] sm:$0xff] %v842_v50 }
 0x234   :  { %1223 = shalt.err (!%p1220_p0)
}
 0x235   :  { %s1224_s12 = scalar_lea.hbm %s1367_s5, 256 }
 0x236   :  { %p1225_p1 = scmp.ne.s32.totalorder %s1367_s5, %s1224_s12  ;;  %p1228_p2 = scmp.lt.u32.totalorder %s1224_s12, %s1367_s5 }
 0x238   :  { %p1230_p3 = pnand %p1228_p2, %p1225_p1 }
 0x23a   :  { %1233 = shalt.err (!%p1230_p3)
}
 0x23b   :  { %s1250_s1 = smov 128   ;;  %s1251_s17 = smov 8  }
 0x23c   :  { %856 = dma.vmem_to_hbm [thread:$0]  %s851_s9, 256, %s1367_s5, [#allocation4], %s1250_s1, %s1250_s1, %s1251_s17  }
 0x23d   :  { %1238 = dma.done.wait [#allocation4], 256  }
 0x23e   :  { %1239 = vsyncadd [#allocation4], 4294967040 }
 0x23f   :  { %860 = vsyncpa [#allocation3], 1 }
 0x240   :  { %861 = vsyncpa [#allocation6], 1 }
 0x241   :  { %862 = vsyncpa [#allocation4], 1 }

</bundles_post_ra>
